<compile_context>
chip_gen: v6e
topology: v6e:2x2x1
jax: 0.10.0
libtpu: 0.0.40
codegen_flags: <defaults>
</compile_context>

<pallas_src>
import jax
import jax.numpy as jnp
from jax.experimental import pallas as pl
from jax.experimental.pallas import tpu as pltpu

_MIB = 1024 * 1024
_VMEM_BUDGET = 24 * _MIB   # target for automatic tile selection
_VMEM_MARGIN = 8 * _MIB    # headroom for Mosaic internal scratch


def _round_up(x, m):
    return (x + m - 1) // m * m


def _pad_axis(x, axis, multiple):
    size = x.shape[axis]
    pad = (-size) % multiple
    if pad == 0:
        return x
    widths = [(0, 0)] * x.ndim
    widths[axis] = (0, pad)
    return jnp.pad(x, widths)


def _vmem_estimate(tm, tk, H, xb, wb, ib, ob):
    # Double-buffered input/output streams + f32 accumulator + (2,H) scale/shift.
    return (2 * tm * tk * xb          # x rows
            + 2 * tk * H * wb         # folded weight
            + 2 * tm * H * ib         # residual
            + 2 * tm * H * ob         # output
            + tm * H * 4              # f32 accumulator scratch
            + 2 * 2 * H * 4)          # scale/shift


def _auto_tiles(M, I, H, xb, wb, ib, ob):
    """Pick (tm, tk).  tk == I means a single K step: the weight block index
    never changes across the grid, so the weight is streamed from HBM once."""
    # Row tile: as large as possible while keeping >= 2 row tiles so the
    # "parallel" axis can shard across both v7x TensorCores.
    tm_cands = [t for t in (1024, 512, 256) if M >= 2 * t]
    if not tm_cands:
        tm_cands = [min(_round_up(M, 8), 512)]
    # Prefer the weight-resident (single-K) layout.
    for tm in tm_cands:
        if _vmem_estimate(tm, I, H, xb, wb, ib, ob) <= _VMEM_BUDGET:
            return tm, I
    # Otherwise chunk the contraction dim.
    for tm in tm_cands:
        for tk in (1536, 1024, 512, 256):
            if tk < I and _vmem_estimate(tm, tk, H, xb, wb, ib, ob) <= _VMEM_BUDGET:
                return tm, tk
    return tm_cands[-1], min(256, I)


def pcl_output_kernel(x_ref, w_ref, inp_ref, ss_ref, o_ref, acc_ref):
    k = pl.program_id(1)

    @pl.when(k == 0)
    def _():
        # Fold the epilogue into the accumulator init instead of zero-filling:
        #   acc = inp * scale + shift'   (residual block is resident at k==0)
        ss = ss_ref[...]
        acc_ref[...] = inp_ref[...].astype(jnp.float32) * ss[0:1, :] + ss[1:2, :]

    # Dense (bias and BN scale pre-folded into the weight): MXU, f32 accumulate.
    acc_ref[...] += jnp.dot(
        x_ref[...], w_ref[...], preferred_element_type=jnp.float32
    )

    @pl.when(k == pl.num_programs(1) - 1)
    def _():
        # Pure cast + store; the BN/residual epilogue already lives in acc.
        o_ref[...] = acc_ref[...].astype(o_ref.dtype)


def pcl_output(
    hidden_states,
    input_tensor,
    params,
    *,
    eps=1e-5,
    tm=None,           # None -> auto (largest of 1024/512/256 keeping >=2 row tiles)
    tk=None,           # None -> auto (full I if weight-resident fits, else chunked)
    compute_dtype=None,  # None -> hidden_states.dtype (bf16 in -> bf16 MXU path)
):
    """hidden_states: (B, S, I); input_tensor: (B, S, H) -> (B, S, H)."""
    B, S, I = hidden_states.shape
    H = input_tensor.shape[-1]
    M = B * S
    out_dtype = hidden_states.dtype

    if compute_dtype is None:
        compute_dtype = hidden_states.dtype

    w = params["dense_w"].astype(jnp.float32)             # (I, H)
    b = params["dense_b"].astype(jnp.float32)             # (H,)
    gamma = params["bn_gamma"].astype(jnp.float32)
    beta = params["bn_beta"].astype(jnp.float32)
    r_mean = params["bn_running_mean"].astype(jnp.float32)
    r_var = params["bn_running_var"].astype(jnp.float32)

    # Host-side folding of linear bias + BN (eval) into scale/shift and the weight.
    inv_std = 1.0 / jnp.sqrt(r_var + eps)
    scale = gamma * inv_std                                # (H,)
    shift = (b - r_mean) * scale + beta                    # (H,)
    w_folded = (w * scale[None, :]).astype(compute_dtype)  # (I, H), MXU dtype

    x2d = hidden_states.reshape(M, I).astype(compute_dtype)
    inp2d = input_tensor.reshape(M, H)
    ss = jnp.stack([scale, shift], axis=0)                 # (2, H) f32, one stream

    xb = jnp.dtype(compute_dtype).itemsize
    wb = xb
    ib = jnp.dtype(inp2d.dtype).itemsize
    ob = jnp.dtype(out_dtype).itemsize

    if tm is None and tk is None:
        tm, tk = _auto_tiles(M, I, H, xb, wb, ib, ob)
    else:
        tm = 512 if tm is None else tm
        tk = 1536 if tk is None else tk
    tm_eff = tm if M >= tm else _round_up(M, 8)
    tk_eff = tk if I >= tk else I

    # Zero-pad ragged dims (zeros are inert in the matmul; padded rows are
    # sliced off after the call).
    x2d = _pad_axis(_pad_axis(x2d, 0, tm_eff), 1, tk_eff)
    inp2d = _pad_axis(inp2d, 0, tm_eff)
    w_folded = _pad_axis(w_folded, 0, tk_eff)
    M_pad, I_pad = x2d.shape

    grid = (M_pad // tm_eff, I_pad // tk_eff)

    vmem_bytes = _vmem_estimate(tm_eff, tk_eff, H, xb, wb, ib, ob) + _VMEM_MARGIN

    # Weight is streamed once if its block index is constant (single K step),
    # otherwise once per row tile.
    w_streams = 1 if grid[1] == 1 else grid[0]
    cost = pl.CostEstimate(
        flops=2 * M_pad * I_pad * H,
        transcendentals=0,
        bytes_accessed=(M_pad * I_pad * xb
                        + w_streams * I_pad * H * wb
                        + M_pad * H * (ib + ob)),
    )

    out2d = pl.pallas_call(
        pcl_output_kernel,
        out_shape=jax.ShapeDtypeStruct((M_pad, H), out_dtype),
        grid_spec=pltpu.PrefetchScalarGridSpec(
            num_scalar_prefetch=0,
            grid=grid,
            in_specs=[
                pl.BlockSpec((tm_eff, tk_eff), lambda i, k: (i, k)),  # x rows
                pl.BlockSpec((tk_eff, H), lambda i, k: (k, 0)),       # folded W
                pl.BlockSpec((tm_eff, H), lambda i, k: (i, 0)),       # residual
                pl.BlockSpec((2, H), lambda i, k: (0, 0)),            # [scale; shift]
            ],
            out_specs=pl.BlockSpec((tm_eff, H), lambda i, k: (i, 0)),
            scratch_shapes=[pltpu.VMEM((tm_eff, H), jnp.float32)],
        ),
        compiler_params=pltpu.CompilerParams(
            # Rows are independent -> "parallel" (megacore on v7x); the K
            # reduction carries the accumulator -> "arbitrary", kept last.
            dimension_semantics=("parallel", "arbitrary"),
            # Right-sized VMEM budget (estimate + margin), not physical max.
            vmem_limit_bytes=int(vmem_bytes),
        ),
        cost_estimate=cost,
    )(x2d, w_folded, inp2d, ss)

    return out2d[:M].reshape(B, S, H)


def reference(hidden_states, input_tensor, params, eps=1e-5):
    h = (
        jnp.einsum(
            "bsi,ih->bsh",
            hidden_states,
            params["dense_w"],
            precision=jax.lax.Precision.HIGHEST,
        )
        + params["dense_b"]
    )
    x = h + input_tensor
    inv_std = 1.0 / jnp.sqrt(params["bn_running_var"] + eps)
    return (x - params["bn_running_mean"]) * params["bn_gamma"] * inv_std + params[
        "bn_beta"
    ]


if __name__ == "__main__":
    eps = 1e-5

    # ---- Small config consistent with the module: intermediate=64, hidden=32
    B, S, I, H = 2, 8, 64, 32
    key = jax.random.PRNGKey(0)
    k0, k1, k2, k3, k4, k5, k6, k7 = jax.random.split(key, 8)
    params = {
        "dense_w": jax.random.normal(k0, (I, H), jnp.float32) * 0.05,  # Linear W^T
        "dense_b": jax.random.normal(k1, (H,), jnp.float32) * 0.05,
        "bn_gamma": 1.0 + 0.1 * jax.random.normal(k2, (H,), jnp.float32),
        "bn_beta": 0.1 * jax.random.normal(k3, (H,), jnp.float32),
        "bn_running_mean": 0.1 * jax.random.normal(k4, (H,), jnp.float32),
        "bn_running_var": 1.0 + 0.1 * jax.random.uniform(k5, (H,), jnp.float32),
    }
    hidden_states = jax.random.normal(k6, (B, S, I), jnp.float32)
    input_tensor = jax.random.normal(k7, (B, S, H), jnp.float32)

    out = pcl_output(hidden_states, input_tensor, params, eps=eps)
    out = jax.block_until_ready(out)
    ref = reference(hidden_states, input_tensor, params, eps=eps)
    assert out.shape == (B, S, H)
    assert jnp.allclose(out, ref, atol=1e-5, rtol=1e-5), "mismatch vs reference (f32)"

    # ---- Larger, realistic shapes: exercises the default bf16 operand path
    # ---- (compute_dtype inferred from the inputs), the auto tile selection
    # ---- (tm=512 -> 2-tile parallel row axis) and the weight-resident
    # ---- single-K layout (3072x768 bf16 weight stays in VMEM across tiles).
    Bl, Sl, Il, Hl = 8, 128, 3072, 768
    kb = jax.random.split(jax.random.PRNGKey(1), 8)
    params_l = {
        "dense_w": jax.random.normal(kb[0], (Il, Hl), jnp.float32) * 0.02,
        "dense_b": jax.random.normal(kb[1], (Hl,), jnp.float32) * 0.02,
        "bn_gamma": 1.0 + 0.1 * jax.random.normal(kb[2], (Hl,), jnp.float32),
        "bn_beta": 0.1 * jax.random.normal(kb[3], (Hl,), jnp.float32),
        "bn_running_mean": 0.1 * jax.random.normal(kb[4], (Hl,), jnp.float32),
        "bn_running_var": 1.0 + 0.1 * jax.random.uniform(kb[5], (Hl,), jnp.float32),
    }
    hs_l = jax.random.normal(kb[6], (Bl, Sl, Il), jnp.bfloat16)
    inp_l = jax.random.normal(kb[7], (Bl, Sl, Hl), jnp.bfloat16)

    out_l = pcl_output(hs_l, inp_l, params_l, eps=eps)   # compute dtype defaults to bf16
    out_l = jax.block_until_ready(out_l)
    ref_l = reference(
        hs_l.astype(jnp.float32), inp_l.astype(jnp.float32), params_l, eps=eps
    )
    assert out_l.shape == (Bl, Sl, Hl)
    assert jnp.allclose(
        out_l.astype(jnp.float32), ref_l, atol=5e-2, rtol=5e-2
    ), "mismatch vs reference (bf16)"

    print("KERNEL_OK")
</pallas_src>

<mosaic_0001>
module attributes {stable_mosaic.version = 11 : i64} {
  func.func @pcl_output_kernel(%arg0: i32, %arg1: i32, %arg2: memref<16x64xf32, #tpu.memory_space<vmem>>, %arg3: memref<64x32xf32, #tpu.memory_space<vmem>>, %arg4: memref<16x32xf32, #tpu.memory_space<vmem>>, %arg5: memref<2x32xf32, #tpu.memory_space<vmem>>, %arg6: memref<16x32xf32, #tpu.memory_space<vmem>>, %arg7: memref<16x32xf32, #tpu.memory_space<vmem>>) attributes {dimension_semantics = [#tpu.dimension_semantics<parallel>, #tpu.dimension_semantics<arbitrary>], iteration_bounds = array<i64: 1, 1>, scalar_prefetch = 0 : i64, scratch_operands = 1 : i64, tpu.core_type = #tpu.core_type<tc>, window_params = [{transform_indices = @transform_0, window_bounds = array<i64: 16, 64>}, {transform_indices = @transform_1, window_bounds = array<i64: 64, 32>}, {transform_indices = @transform_2, window_bounds = array<i64: 16, 32>}, {pipeline_mode = #tpu.pipeline_mode<synchronous>, transform_indices = @transform_3, window_bounds = array<i64: 2, 32>}, {transform_indices = @transform_4, window_bounds = array<i64: 16, 32>}]} {
    %c0_i32 = arith.constant 0 : i32
    %0 = arith.cmpi eq, %arg1, %c0_i32 : i32
    %1 = arith.extui %0 : i1 to i32
    %c0_i32_0 = arith.constant 0 : i32
    %2 = arith.cmpi ne, %1, %c0_i32_0 : i32
    scf.if %2 {
      %c0_10 = arith.constant 0 : index
      %c0_11 = arith.constant 0 : index
      %12 = vector.load %arg5[%c0_10, %c0_11] : memref<2x32xf32, #tpu.memory_space<vmem>>, vector<2x32xf32>
      %c0_12 = arith.constant 0 : index
      %c0_13 = arith.constant 0 : index
      %13 = vector.load %arg4[%c0_12, %c0_13] : memref<16x32xf32, #tpu.memory_space<vmem>>, vector<16x32xf32>
      %14 = vector.extract_strided_slice %12 {offsets = [0, 0], sizes = [1, 32], strides = [1, 1]} : vector<2x32xf32> to vector<1x32xf32>
      %15 = vector.broadcast %14 : vector<1x32xf32> to vector<16x32xf32>
      %16 = arith.mulf %13, %15 : vector<16x32xf32>
      %17 = vector.extract_strided_slice %12 {offsets = [1, 0], sizes = [1, 32], strides = [1, 1]} : vector<2x32xf32> to vector<1x32xf32>
      %18 = vector.broadcast %17 : vector<1x32xf32> to vector<16x32xf32>
      %19 = arith.addf %16, %18 : vector<16x32xf32>
      %c0_14 = arith.constant 0 : index
      %c0_15 = arith.constant 0 : index
      %20 = vector.load %arg7[%c0_14, %c0_15] : memref<16x32xf32, #tpu.memory_space<vmem>>, vector<16x32xf32>
      tpu.vector_store %arg7[%c0_14, %c0_15], %19 {strides = array<i32>} : memref<16x32xf32, #tpu.memory_space<vmem>>, vector<16x32xf32>,
    } else {
    }
    %c0 = arith.constant 0 : index
    %c0_1 = arith.constant 0 : index
    %3 = vector.load %arg7[%c0, %c0_1] : memref<16x32xf32, #tpu.memory_space<vmem>>, vector<16x32xf32>
    %c0_2 = arith.constant 0 : index
    %c0_3 = arith.constant 0 : index
    %4 = vector.load %arg2[%c0_2, %c0_3] : memref<16x64xf32, #tpu.memory_space<vmem>>, vector<16x64xf32>
    %c0_4 = arith.constant 0 : index
    %c0_5 = arith.constant 0 : index
    %5 = vector.load %arg3[%c0_4, %c0_5] : memref<64x32xf32, #tpu.memory_space<vmem>>, vector<64x32xf32>
    %cst = arith.constant dense<0.000000e+00> : vector<16x32xf32>
    %6 = tpu.matmul %4, %5, %cst {dimension_numbers = #tpu.dot_dimension_numbers<[1], [0], [0], [1], [0, 0, 1, 1], [], []>} : vector<16x64xf32>, vector<64x32xf32>, vector<16x32xf32> -> vector<16x32xf32>
    %7 = arith.addf %3, %6 : vector<16x32xf32>
    %c0_6 = arith.constant 0 : index
    %c0_7 = arith.constant 0 : index
    %8 = vector.load %arg7[%c0_6, %c0_7] : memref<16x32xf32, #tpu.memory_space<vmem>>, vector<16x32xf32>
    tpu.vector_store %arg7[%c0_6, %c0_7], %7 {strides = array<i32>} : memref<16x32xf32, #tpu.memory_space<vmem>>, vector<16x32xf32>,
    %c0_i32_8 = arith.constant 0 : i32
    %9 = arith.cmpi eq, %arg1, %c0_i32_8 : i32
    %10 = arith.extui %9 : i1 to i32
    %c0_i32_9 = arith.constant 0 : i32
    %11 = arith.cmpi ne, %10, %c0_i32_9 : i32
    scf.if %11 {
      %c0_10 = arith.constant 0 : index
      %c0_11 = arith.constant 0 : index
      %12 = vector.load %arg7[%c0_10, %c0_11] : memref<16x32xf32, #tpu.memory_space<vmem>>, vector<16x32xf32>
      %c0_12 = arith.constant 0 : index
      %c0_13 = arith.constant 0 : index
      %13 = vector.load %arg6[%c0_12, %c0_13] : memref<16x32xf32, #tpu.memory_space<vmem>>, vector<16x32xf32>
      tpu.vector_store %arg6[%c0_12, %c0_13], %12 {strides = array<i32>} : memref<16x32xf32, #tpu.memory_space<vmem>>, vector<16x32xf32>,
    } else {
    }
    return
  }
  func.func @transform_0(%arg0: i32, %arg1: i32) -> (i32, i32) {
    %c0_i32 = arith.constant 0 : i32
    return %arg0, %arg1 : i32, i32
  }
  func.func @transform_1(%arg0: i32, %arg1: i32) -> (i32, i32) {
    %c0_i32 = arith.constant 0 : i32
    %c0_i32_0 = arith.constant 0 : i32
    return %arg1, %c0_i32 : i32, i32
  }
  func.func @transform_2(%arg0: i32, %arg1: i32) -> (i32, i32) {
    %c0_i32 = arith.constant 0 : i32
    %c0_i32_0 = arith.constant 0 : i32
    return %arg0, %c0_i32 : i32, i32
  }
  func.func @transform_3(%arg0: i32, %arg1: i32) -> (i32, i32) {
    %c0_i32 = arith.constant 0 : i32
    %c0_i32_0 = arith.constant 0 : i32
    %c0_i32_1 = arith.constant 0 : i32
    return %c0_i32, %c0_i32_0 : i32, i32
  }
  func.func @transform_4(%arg0: i32, %arg1: i32) -> (i32, i32) {
    %c0_i32 = arith.constant 0 : i32
    %c0_i32_0 = arith.constant 0 : i32
    return %arg0, %c0_i32 : i32, i32
  }
}

</mosaic_0001>

<bundles_post_ra>
// kernel: tpu_custom_call.1
= control target key start
LH: loop header
LB: loop body
LE: loop exit
PB: predicated region body
PF: predicated region fallthrough
CT: control target
= control target key end

     0   :  { %vm52_vm0 = vcmask 523264   ;;  %v25_v2 = vlaneseq  ;;  %s296_s0 = inlined_call_operand.vmem [shape: f32[16,64], index: 0, kind: input, shape index: {}]   ;;  %s297_s1 = inlined_call_operand.vmem [shape: f32[64,32], index: 1, kind: input, shape index: {}]   ;;  %s298_s2 = inlined_call_operand.vmem [shape: f32[16,32], index: 2, kind: input, shape index: {}]   ;;  %s299_s3 = inlined_call_operand.vmem [shape: f32[2,32], index: 3, kind: input, shape index: {}]   ;;  %s300_s4 = inlined_call_operand.hbm [shape: f32[16,32], index: 4, kind: output, shape index: {}]  }
   0x1   :  { %v51_v0 = vld [vmem:[%s297_s1 + $0x38] sm:$0xff]  ;;  %v50_v1 = vld [vmem:[%s297_s1 + $0x30] sm:$0xff]  ;;  %v49_v3 = vld [vmem:[%s297_s1 + $0x28] sm:$0xff] }
   0x2   :  { %174 = vmatprep.subr.mxu0 %v51_v0  ;;  %v42_v4 = vld [vmem:[%s296_s0] sm:$0xff]  ;;  %v26_v5 = vshrl.u32 %v25_v2, 7 }
   0x3   :  { %175 = vmatpush3.msra.mxu0 %v51_v0  ;;  %190 = vmatprep.mubr.msk.f32.mxu0 %vm52_vm0, %v42_v4  ;;  %v22_v6 = vld [vmem:[%s299_s3] sm:$0x3] }
   0x4   :  { %176 = vmatprep.subr.mxu0 %v50_v1  ;;  %v48_v7 = vld [vmem:[%s297_s1 + $0x20] sm:$0xff]  ;;  %v27_v8 = vsub.s32 0, %v26_v5  ;;  %v33_v9 = vsub.s32 1, %v26_v5 }
   0x5   :  { %177 = vmatpush3.msra.mxu0 %v50_v1 }
   0x6   :  { %9 = vsyncpa [#allocation4], 0  ;;  %178 = vmatprep.subr.mxu0 %v49_v3  ;;  %v24_v10 = vld [vmem:[%s298_s2 + $0x8] sm:$0xff]  ;;  %v47_v11 = vld [vmem:[%s297_s1 + $0x18] sm:$0xff]  ;;  %v28_v12 = vrot.slane %v22_v6, %v27_v8  ;;  %v34_v13 = vrot.slane %v22_v6, %v33_v9  ;;  %vm37_vm1 = vcmask 261120  }
   0x7   :  { %179 = vmatpush3.msra.mxu0 %v49_v3  ;;  %v46_v14 = vld [vmem:[%s297_s1 + $0x10] sm:$0xff]  ;;  %v45_v16 = vld [vmem:[%s297_s1 + $0x8] sm:$0xff]  ;;  %v44_v18 = vld [vmem:[%s297_s1] sm:$0xff] }
   0x8   :  { %180 = vmatprep.subr.mxu0 %v48_v7  ;;  %v30_v15 = vmul.f32 %v28_v12, %v24_v10  ;;  %v43_v19 = vld [vmem:[%s296_s0 + $0x8] sm:$0xff]  ;;  %v23_v20 = vld [vmem:[%s298_s2] sm:$0xff]  ;;  %s218_s0 = smov [#allocation3]  }
   0x9   :  { %181 = vmatpush3.msra.mxu0 %v48_v7  ;;  %v29_v21 = vmul.f32 %v28_v12, %v23_v20  ;;  %s151_s1 = sshll.u32 %s218_s0, 4  ;;  %s152_s1 = int_to_ptr.vmem [resolvable:$true] %s151_s1 }
   0xa   :  { %182 = vmatprep.subr.mxu0 %v47_v11  ;;  %v36_v17 = vadd.f32 %v34_v13, %v30_v15  ;;  %s196_s2 = scalar_lea.vmem %s152_s1, 256  ;;  %p201_p1 = scmp.lt.s32.totalorder %s152_s1, %s152_s1 }
   0xb   :  { %183 = vmatpush3.msra.mxu0 %v47_v11  ;;  %v35_v22 = vadd.f32 %v34_v13, %v29_v21  ;;  %p197_p0 = scmp.ne.s32.totalorder %s152_s1, %s196_s2  ;;  %p202_p2 = scmp.lt.s32.totalorder %s196_s2, %s196_s2 }
   0xc   :  { %184 = vmatprep.subr.mxu0 %v46_v14  ;;  %39 = vst.msk [vmem:[#allocation2 + $0x8] sm:$0xff] %vm37_vm1, %v36_v17 }
   0xd   :  { %185 = vmatpush3.msra.mxu0 %v46_v14  ;;  %38 = vst.msk [vmem:[#allocation2] sm:$0xff] %vm37_vm1, %v35_v22  ;;  %p203_p3 = por %p202_p2, %p201_p1 }
   0xe   :  { %186 = vmatprep.subr.mxu0 %v45_v16 }
   0xf   :  { %187 = vmatpush3.msra.mxu0 %v45_v16  ;;  %p204_p4 = pnand %p203_p3, %p197_p0 }
  0x10   :  { %188 = vmatprep.subr.mxu0 %v44_v18 }
  0x11   :  { %189 = vmatpush3.msra.mxu0 %v44_v18 }
  0x12   :  { %191 = vmatmul.mubr.msk.f32.vlgmr.msra.gmra.mxu0 %vm52_vm0, %v43_v19 }
  0x13   :  { %v41_v23 = vld [vmem:[#allocation2 + $0x8] sm:$0xff] }
  0x14   :  { %v40_v25 = vld [vmem:[#allocation2] sm:$0xff] }
  0xd2   :  { %v192_v24 = vpop.f32.mrf.mxu0 }
  0xd3   :  { %v135_v26 = vadd.f32 %v192_v24, %v41_v23 }
  0xd4   :  { %v125_v27 = vpop.f32.mrf.mxu0 }
  0xd5   :  { %138 = vst.msk [vmem:[#allocation2 + $0x8] sm:$0xff] %vm37_vm1, %v135_v26  ;;  %v134_v28 = vadd.f32 %v125_v27, %v40_v25 }
  0xd7   :  { %137 = vst.msk [vmem:[#allocation2] sm:$0xff] %vm37_vm1, %v134_v28 }
  0xdc   :  { %v143_v29 = vld [vmem:[#allocation2 + $0x8] sm:$0xff] }
  0xdd   :  { %145 = vst.msk [vmem:[#allocation3 + $0x8] sm:$0xff] %vm37_vm1, %v143_v29 }
  0xde   :  { %v142_v30 = vld [vmem:[#allocation2] sm:$0xff] }
  0xdf   :  { %144 = vst.msk [vmem:[#allocation3] sm:$0xff] %vm37_vm1, %v142_v30 }
  0xe0   :  { %207 = shalt.err (!%p204_p4)
}
  0xe1   :  { %s219_s14 = smov 128   ;;  %s220_s15 = smov 8  }
  0xe2   :  { %157 = dma.vmem_to_hbm [thread:$0]  %s152_s1, 256, %s300_s4, [#allocation4], %s219_s14, %s219_s14, %s220_s15  }
  0xe3   :  { %216 = dma.done.wait [#allocation4], 256  }
  0xe4   :  { %217 = vsyncadd [#allocation4], 4294967040 }
  0xe5   :  { %161 = vsyncpa [#allocation4], 1 }

</bundles_post_ra>
